<compile_context>
chip_gen: v7x
topology: tpu7x:2x2x1
jax: 0.10.0
libtpu: 0.0.40
codegen_flags: <defaults>
</compile_context>

<pallas_src>
import math
import functools

import jax
import jax.numpy as jnp
from jax.experimental import pallas as pl
from jax.experimental.pallas import tpu as pltpu


def _round_up(x, m):
    return ((x + m - 1) // m) * m


def _pick_tile_n(n_pad, grid_m, small_batch, k_elems, tm):
    """Pick a lane-dense N tile. Prefer the largest tile that (a) fits a conservative
    VMEM budget with triple-buffered weights and (b) keeps the total number of
    'parallel' blocks >= 2 (so v7x's second TensorCore gets work)."""
    cap = 2048 if small_batch else 512
    cands = [t for t in (2048, 1024, 512, 256, 128) if t <= cap and n_pad % t == 0]
    if not cands:                      # n_pad is always a multiple of 128, but be safe
        return n_pad

    budget = 40 * 1024 * 1024

    def fits(tn):
        need = (2 * tm * k_elems * 4       # x tiles, f32, double-buffered
                + 3 * k_elems * tn * 2     # weight tiles, bf16, up to 3 buffers
                + 2 * 8 * tn * 4           # bias tiles (padded to 8 sublanes)
                + 2 * tm * tn * 4)         # output tiles, f32
        return need <= budget

    # First pass: keep >= 2 parallel blocks (v7x megacore); second pass: just fit VMEM.
    for tn in cands:
        if fits(tn) and grid_m * (n_pad // tn) >= 2:
            return tn
    for tn in cands:
        if fits(tn):
            return tn
    return cands[-1]


def _dense_bias_relu_kernel(x_ref, w_ref, b_ref, o_ref):
    """One (tm, tn) output tile; full K in a single block.

    x_ref: (tm, K)   activations, f32 (cast to bf16 in-kernel for the MXU)
    w_ref: (K, tn)   weight, pre-transposed / cast to bf16 at init time
    b_ref: (1, tn)   bias, f32
    o_ref: (tm, tn)  output tile, f32
    """
    x = x_ref[...].astype(jnp.bfloat16)          # VPU cast, hidden under DMA/MXU
    y = jnp.dot(x, w_ref[...], preferred_element_type=jnp.float32)
    y = y + b_ref[...]                           # f32 bias broadcast over rows
    o_ref[...] = jnp.maximum(y, 0.0).astype(o_ref.dtype)


def prepare_unflatten_dense_params(weight, bias, compute_dtype=jnp.bfloat16):
    """One-time (init-time) parameter prep, NOT in the hot path:
      weight (out_flat, in_size) f32 -> (in_size, n_pad) compute_dtype (transposed,
      N padded to a multiple of 128; K left UNPADDED so no zero rows are streamed)
      bias   (out_flat,)         f32 -> (1, n_pad) f32
    """
    out_flat, in_size = weight.shape
    n_pad = _round_up(out_flat, 128)
    w = jnp.pad(weight, ((0, n_pad - out_flat), (0, 0)))
    w = w.T.astype(compute_dtype)                                    # (in_size, n_pad)
    b = jnp.pad(bias, (0, n_pad - out_flat)).astype(jnp.float32).reshape(1, n_pad)
    return w, b
    # TODO(synk): quantized weight path (int8 + per-channel scales on v5e/v6e,
    # fp8 e4m3 on v7x, scales folded into the bias/ReLU epilogue) not implemented.


def unflatten_dense_block(x, w_prepped, b_prepped, out_size):
    """Forward pass of UnflattenDenseBlock (eval mode):
        y = ReLU(x @ W^T + b) reshaped to (B, *out_size)

    x:          (B, in_size) f32
    w_prepped:  (in_size, n_pad) bf16  -- from prepare_unflatten_dense_params
    b_prepped:  (1, n_pad) f32
    """
    batch, in_size = x.shape
    out_flat = int(math.prod(out_size))
    n_pad = _round_up(out_flat, 128)

    assert w_prepped.shape == (in_size, n_pad), "weight prepared for a different shape"
    assert b_prepped.shape == (1, n_pad), "bias prepared for a different shape"

    # M tiling: small batch -> single full-batch tile (full-dim block is exempt from
    # the sublane rule, so NO batch padding); large batch -> 256-row tiles for the
    # 256-wide MXU on v6e/v7x (128 if that would over-pad).
    small_batch = batch <= 256
    if small_batch:
        tm, b_pad = batch, batch
    else:
        tm = 256 if batch >= 512 else 128
        b_pad = _round_up(batch, tm)
    grid_m = b_pad // tm

    tn = _pick_tile_n(n_pad, grid_m, small_batch, in_size, tm)
    grid_n = n_pad // tn
    grid = (grid_m, grid_n)

    xp = x if b_pad == batch else jnp.pad(x, ((0, b_pad - batch), (0, 0)))
    # x stays f32 in HBM; bf16 cast happens inside the kernel (single HBM read of x).

    # Weight stream: triple-buffer in the tiny-batch, weight-DMA-bound regime
    # (only when there are enough N steps for the extra buffer to matter).
    w_spec_kwargs = {}
    weight_bufs = 2
    if small_batch and grid_n >= 3:
        w_spec_kwargs["pipeline_mode"] = pl.Buffered(3)
        weight_bufs = 3
    w_spec = pl.BlockSpec((in_size, tn), lambda i, j: (0, j), **w_spec_kwargs)

    out_bytes = b_pad * n_pad * 4
    cost = pl.CostEstimate(
        flops=2 * b_pad * in_size * n_pad,
        transcendentals=0,
        bytes_accessed=(xp.size * 4 + w_prepped.size * 2 + b_prepped.size * 4
                        + out_bytes),
    )

    # Honest VMEM limit for the chosen tiles (+2x headroom for compiler scratch),
    # clamped well under v7x's 64 MiB physical VMEM.
    vmem_need = (2 * tm * in_size * 4
                 + weight_bufs * in_size * tn * 2
                 + 2 * 8 * tn * 4
                 + 2 * tm * tn * 4)
    vmem_limit = min(48 * 1024 * 1024, max(16 * 1024 * 1024, 2 * vmem_need))

    y = pl.pallas_call(
        _dense_bias_relu_kernel,
        out_shape=jax.ShapeDtypeStruct((b_pad, n_pad), jnp.float32),
        grid_spec=pltpu.PrefetchScalarGridSpec(
            num_scalar_prefetch=0,
            grid=grid,
            in_specs=[
                pl.BlockSpec((tm, in_size), lambda i, j: (i, 0)),   # x tile (full K)
                w_spec,                                             # weight tile (full K)
                pl.BlockSpec((1, tn), lambda i, j: (0, j)),         # bias tile
            ],
            out_specs=pl.BlockSpec((tm, tn), lambda i, j: (i, j)),
        ),
        compiler_params=pltpu.CompilerParams(
            dimension_semantics=("parallel", "parallel"),
            vmem_limit_bytes=vmem_limit,
        ),
        cost_estimate=cost,
    )(xp, w_prepped, b_prepped)

    # batch_normalization defaults to False in the module -> no BatchNorm branch.
    # nn.Dropout is identity in eval mode.
    # TODO(synk): training-mode dropout and the BatchNorm1d branch are not implemented.
    # TODO(synk): very large in_size (K so big that a full-K block overflows VMEM)
    #             would need a K-tiled accumulation path; not implemented.

    # Strip padding only if any padding was introduced; nn.Unflatten(dim=1) is a free
    # row-major reshape.
    if b_pad != batch or n_pad != out_flat:
        y = y[:batch, :out_flat]
    return y.reshape((batch,) + tuple(out_size))


if __name__ == "__main__":
    key = jax.random.PRNGKey(0)
    B = 8
    in_size = 32
    out_size = (4, 8, 8)            # prod = 256
    out_flat = int(math.prod(out_size))

    kx, kw, kb = jax.random.split(key, 3)
    bound = 1.0 / math.sqrt(in_size)
    x = jax.random.normal(kx, (B, in_size), dtype=jnp.float32)
    weight = jax.random.uniform(kw, (out_flat, in_size), minval=-bound, maxval=bound,
                                dtype=jnp.float32)
    bias = jax.random.uniform(kb, (out_flat,), minval=-bound, maxval=bound,
                              dtype=jnp.float32)

    # One-time (init-time) parameter prep: pad N, transpose, cast to bf16.
    w_prepped, b_prepped = prepare_unflatten_dense_params(weight, bias)

    fwd = jax.jit(functools.partial(unflatten_dense_block, out_size=out_size))
    out = jax.block_until_ready(fwd(x, w_prepped, b_prepped))

    # Reference matching the kernel numerics (bf16 MXU inputs, f32 accumulation).
    x_r = x.astype(jnp.bfloat16).astype(jnp.float32)
    w_r = weight.astype(jnp.bfloat16).astype(jnp.float32)
    ref = jnp.maximum(x_r @ w_r.T + bias, 0.0).reshape((B,) + out_size)

    assert out.shape == (B,) + out_size
    assert jnp.allclose(out, ref, atol=1e-3, rtol=1e-3), \
        float(jnp.max(jnp.abs(out - ref)))

    print("KERNEL_OK")
</pallas_src>

<mosaic_0001>
module attributes {stable_mosaic.version = 11 : i64} {
  func.func @_dense_bias_relu_kernel(%arg0: i32, %arg1: i32, %arg2: memref<8x32xf32, #tpu.memory_space<vmem>>, %arg3: memref<32x128xbf16, #tpu.memory_space<vmem>>, %arg4: memref<1x128xf32, #tpu.memory_space<vmem>>, %arg5: memref<8x128xf32, #tpu.memory_space<vmem>>) attributes {dimension_semantics = [#tpu.dimension_semantics<parallel>, #tpu.dimension_semantics<parallel>], iteration_bounds = array<i64: 1, 2>, scalar_prefetch = 0 : i64, scratch_operands = 0 : i64, tpu.core_type = #tpu.core_type<tc>, window_params = [{transform_indices = @transform_0, window_bounds = array<i64: 8, 32>}, {transform_indices = @transform_1, window_bounds = array<i64: 32, 128>}, {transform_indices = @transform_2, window_bounds = array<i64: 1, 128>}, {transform_indices = @transform_3, window_bounds = array<i64: 8, 128>}]} {
    %c0 = arith.constant 0 : index
    %c0_0 = arith.constant 0 : index
    %0 = vector.load %arg2[%c0, %c0_0] : memref<8x32xf32, #tpu.memory_space<vmem>>, vector<8x32xf32>
    %1 = arith.truncf %0 : vector<8x32xf32> to vector<8x32xbf16>
    %c0_1 = arith.constant 0 : index
    %c0_2 = arith.constant 0 : index
    %2 = vector.load %arg3[%c0_1, %c0_2] : memref<32x128xbf16, #tpu.memory_space<vmem>>, vector<32x128xbf16>
    %cst = arith.constant dense<0.000000e+00> : vector<8x128xf32>
    %3 = tpu.matmul %1, %2, %cst {dimension_numbers = #tpu.dot_dimension_numbers<[1], [0], [0], [1], [0, 0, 1, 1], [], []>} : vector<8x32xbf16>, vector<32x128xbf16>, vector<8x128xf32> -> vector<8x128xf32>
    %c0_3 = arith.constant 0 : index
    %c0_4 = arith.constant 0 : index
    %4 = vector.load %arg4[%c0_3, %c0_4] : memref<1x128xf32, #tpu.memory_space<vmem>>, vector<1x128xf32>
    %5 = vector.broadcast %4 : vector<1x128xf32> to vector<8x128xf32>
    %6 = arith.addf %3, %5 : vector<8x128xf32>
    %cst_5 = arith.constant 0.000000e+00 : f32
    %7 = vector.broadcast %cst_5 : f32 to vector<8x128xf32>
    %8 = arith.maximumf %6, %7 : vector<8x128xf32>
    %c0_6 = arith.constant 0 : index
    %c0_7 = arith.constant 0 : index
    %9 = vector.load %arg5[%c0_6, %c0_7] : memref<8x128xf32, #tpu.memory_space<vmem>>, vector<8x128xf32>
    tpu.vector_store %arg5[%c0_6, %c0_7], %8 {strides = array<i32>} : memref<8x128xf32, #tpu.memory_space<vmem>>, vector<8x128xf32>,
    return
  }
  func.func @transform_0(%arg0: i32, %arg1: i32) -> (i32, i32) {
    %c0_i32 = arith.constant 0 : i32
    %c0_i32_0 = arith.constant 0 : i32
    return %arg0, %c0_i32 : i32, i32
  }
  func.func @transform_1(%arg0: i32, %arg1: i32) -> (i32, i32) {
    %c0_i32 = arith.constant 0 : i32
    %c0_i32_0 = arith.constant 0 : i32
    return %c0_i32, %arg1 : i32, i32
  }
  func.func @transform_2(%arg0: i32, %arg1: i32) -> (i32, i32) {
    %c0_i32 = arith.constant 0 : i32
    %c0_i32_0 = arith.constant 0 : i32
    return %c0_i32, %arg1 : i32, i32
  }
  func.func @transform_3(%arg0: i32, %arg1: i32) -> (i32, i32) {
    %c0_i32 = arith.constant 0 : i32
    return %arg0, %arg1 : i32, i32
  }
}

</mosaic_0001>

<bundles_post_ra>
// kernel: unflatten_dense_block.1
= control target key start
LH: loop header
LB: loop body
LE: loop exit
PB: predicated region body
PF: predicated region fallthrough
CT: control target
= control target key end

     0   :  { %8 = vsyncpa [#allocation3], 0  ;;  %s837_s0 = inlined_call_operand.hbm [shape: f32[8,32], index: 0, kind: input, shape index: {}]   ;;  %s838_s1 = inlined_call_operand.hbm [shape: bf16[32,256], index: 1, kind: input, shape index: {}]   ;;  %s839_s2 = inlined_call_operand.vmem [shape: f32[1,256], index: 2, kind: input, shape index: {}]   ;;  %s840_s3 = inlined_call_operand.vmem [shape: f32[8,256], index: 3, kind: output, shape index: {}]  }
   0x1   :  { %9 = vsyncpa [#allocation5], 0 }
   0x2   :  { %11 = vsyncpa [#allocation5 + $0x1], 0  ;;  %s670_s12 = smov 0   ;;  %s672_s13 = smov 0  }
   0x3   :  { %s674_s14 = smov 0   ;;  %s676_s15 = smov 0  }
   0x4   :  { %s678_s16 = smov 0   ;;  %s680_s17 = smov 0  }
   0x5 LB: > { %s428_s18 = sadd.s32 4294967295, %s641_s17   ;;  %s62_s19 = sadd.s32 1, %s629_s14  ;;  %s641_s17 = sphi %s680_s17, %s17_s17   ;;  %s637_s16 = sphi %s678_s16, %s859_s16   ;;  %s633_s15 = sphi %s676_s15, %s858_s15   ;;  %s629_s14 = sphi %s674_s14, %s857_s14   ;;  %s625_s13 = sphi %s672_s13, %s856_s13   ;;  %s621_s12 = sphi %s670_s12, %s855_s12  }
   0x6   : > { %p69_p0 = scmp.ne.s32.totalorder %s629_s14, %s625_s13  ;;  %p70_p1 = scmp.eq.s32.totalorder %s641_s17, 0 }
   0x7   : > { %p75_p2 = scmp.ne.s32.totalorder %s625_s13, %s621_s12  ;;  %p704_p3 = scmp.eq.s32.totalorder %s428_s18, 0 }
   0x8   : > { %p71_p4 = por %p70_p1, %p69_p0  ;;  %p430_p5 = scmp.ge.s32.totalorder %s641_s17, 1 }
   0x9   : > { %s846_s20 = scalar_select %p704_p3, 1, 0 }
   0xa   : > { %p711_p6 = por %p704_p3, %p75_p2  ;;  %p140_p7 = scmp.lt.s32.totalorder %s641_s17, 3 }
   0xb   : > { %s643_s23 = smov [#allocation2]   ;;  %p471_p10 = scmp.lt.s32.totalorder %s641_s17, 2 }
   0xc   : > { %s847_s21 = scalar_select %p711_p6, 1, 0 }
   0xd   : > { %p716_p8 = pnand %p430_p5, %p140_p7  ;;  %s155_s24 = sshll.u32 %s643_s23, 4  ;;  %s156_s24 = int_to_ptr.vmem [resolvable:$true] %s155_s24 }
   0xe   : > { %s166_s25 = sand.u32 1, %s629_s14   ;;  %p730_p12 = pnand %p471_p10, %p71_p4 }
   0xf   : > { %s848_s22 = scalar_select %p716_p8, 1, 0 }
  0x10   : > { %p462_p9 = pneg %p716_p8  ;;  %s529_s30 = scalar_lea.hbm %s837_s0, 128 }
  0x11   : > { %s850_s27 = scalar_select %p730_p12, 1, 0 }
  0x12   : > { %p726_p11 = pnand %p462_p9, %p704_p3  ;;  %p530_p13 = scmp.ne.s32.totalorder %s837_s0, %s529_s30 }
  0x13   : > { %p536_p5 = scmp.lt.u32.totalorder %s529_s30, %s837_s0 }
  0x14   : > { %p531_p0 = pneg %p726_p11 }
  0x16   : > { %p532_p1 = pnand %p531_p0, %p530_p13 }
  0x18   : > { %p533_p2 = pneg %p532_p1 }
  0x1a   : > { %p538_p4 = pnand %p536_p5, %p533_p2 }
  0x1c   : > { %541 = shalt.err (!%p538_p4)
}
  0x1d   : > { %s542_s8 = scalar_lea.vmem %s156_s24, 128  ;;  %p550_p6 = scmp.lt.s32.totalorder %s156_s24, %s156_s24 }
  0x1e   : > { %p543_p7 = scmp.ne.s32.totalorder %s156_s24, %s542_s8  ;;  %p551_p3 = scmp.lt.s32.totalorder %s542_s8, %s542_s8 }
  0x20   : > { %p545_p9 = pnand %p543_p7, %p531_p0  ;;  %p552_p8 = por %p551_p3, %p550_p6 }
  0x22   : > { %p546_p10 = pneg %p545_p9 }
  0x24   : > { %p553_p12 = pnand %p552_p8, %p546_p10 }
  0x26   : > { %556 = shalt.err (!%p553_p12)
}
  0x27   : > { %465 = dma.hbm_to_vmem [thread:$0]  (!%p726_p11), %s837_s0, 128, %s156_s24, [#allocation3]  }
  0x28   : > { %s26_s11 = sadd.s32 1, %s637_s16  ;;  %s433_s12 = sshll.u32 %s166_s25, 4 }
  0x29   : > { %p27_p3 = scmp.ge.s32.totalorder %s26_s11, 2  ;;  %s434_s18 = sshll.u32 %s637_s16, 6 }
  0x2a   : > { %s170_s23 = scalar_lea.vmem [#allocation4], %s433_s12  ;;  %s759_s30 = scalar_lea.hbm %s838_s1, %s434_s18 }
  0x2b   : > { %s176_s26 = sshll.u32 %s170_s23, 4  ;;  %s861_s11 = smov (%p27_p3, %s26_s11), 0  ;;  %s761_s26 = int_to_ptr.vmem [resolvable:$true] %s176_s26 }
  0x2c   : > { %s59_s24 = ssub.s32 %s637_s16, %s861_s11  ;;  %s772_s5 = scalar_lea.sflag [#allocation5], %s166_s25 }
  0x2d   : > { %p60_p6 = scmp.eq.s32.totalorder %s59_s24, 0  ;;  %s557_s6 = scalar_lea.hbm %s759_s30, 256 }
  0x2e   : > { %p558_p8 = scmp.ne.s32.totalorder %s759_s30, %s557_s6  ;;  %p851_p11 = scmp.ne.s32.totalorder %s850_s27, 0 }
  0x2f   : > { %s768_s4 = scalar_select %p60_p6, %s629_s14, %s62_s19  }
  0x30   : > { %p559_p12 = pneg %p851_p11  ;;  %s562_s9 = scalar_lea.hbm %s838_s1, 512 }
  0x31   : > { %p563_p1 = scmp.lt.u32.totalorder %s759_s30, %s838_s1  ;;  %p564_p2 = scmp.lt.u32.totalorder %s562_s9, %s557_s6 }
  0x32   : > { %p560_p13 = pnand %p559_p12, %p558_p8  ;;  %p566_p4 = scmp.lt.u32.totalorder %s557_s6, %s759_s30 }
  0x33   : > { %p565_p5 = por %p564_p2, %p563_p1 }
  0x34   : > { %p561_p0 = pneg %p560_p13 }
  0x35   : > { %p567_p7 = por %p566_p4, %p565_p5 }
  0x37   : > { %p568_p9 = pnand %p567_p7, %p561_p0 }
  0x39   : > { %571 = shalt.err (!%p568_p9)
}
  0x3a   : > { %s572_s19 = scalar_lea.vmem %s761_s26, 256  ;;  %s644_s25 = smov [#allocation4]  }
  0x3b   : > { %p573_p10 = scmp.ne.s32.totalorder %s761_s26, %s572_s19  ;;  %s577_s18 = sshll.u32 %s644_s25, 4  ;;  %s578_s18 = int_to_ptr.vmem [resolvable:$false] %s577_s18 }
  0x3c   : > { %s579_s23 = scalar_lea.vmem %s578_s18, 512  ;;  %p580_p8 = scmp.lt.s32.totalorder %s761_s26, %s578_s18 }
  0x3d   : > { %p575_p3 = pnand %p573_p10, %p559_p12  ;;  %p581_p13 = scmp.lt.s32.totalorder %s579_s23, %s572_s19 }
  0x3f   : > { %p576_p6 = pneg %p575_p3  ;;  %p582_p1 = por %p581_p13, %p580_p8 }
  0x41   : > { %p583_p2 = pnand %p582_p1, %p576_p6 }
  0x43   : > { %586 = shalt.err (!%p583_p2)
}
  0x44   : > { %s645_s28 = smov 128   ;;  %s646_s29 = smov 64  }
  0x45   : > { %s647_s24 = smov 4   ;;  %p852_p12 = scmp.ne.s32.totalorder %s848_s22, 0 }
  0x46   : > { %469 = dma.hbm_to_vmem [thread:$0]  (!%p851_p11), %s759_s30, 256, %s761_s26, %s772_s5, %s645_s28, %s646_s29, %s647_s24  }
  0x47   : > { %194 = sbr.rel (%p852_p12) target bundleno = 309 (0x135), region = 32  ;;  %p853_p0 = scmp.ne.s32.totalorder (!%p852_p12), %s846_s20, 0 }
  0x4e   : > { %612 = dma.done.wait (%p853_p0), [#allocation3], 128  }
  0x4f   : > { %614 = vsyncadd (%p853_p0), [#allocation3], 4294967168  ;;  %s200_s6 = sand.u32 1, %s625_s13   ;;  %p854_p5 = scmp.ne.s32.totalorder %s847_s21, 0 }
  0x50   : > { %s437_s7 = sshll.u32 %s200_s6, 4  ;;  %s201_s8 = scalar_lea.sflag [#allocation5], %s200_s6 }
  0x51   : > { %s204_s9 = scalar_lea.vmem [#allocation4], %s437_s7 }
  0x52   : > { %616 = dma.done.wait (%p854_p5), %s201_s8, 256  }
  0x53   : > { %618 = vsyncadd (%p854_p5), %s201_s8, 4294967040  ;;  %v648_v0 = vmov 0.0   ;;  %vm649_vm0 = vmmov 0   ;;  %v527_v1 = vld [vmem:[%s204_s9] sm:$0xff]   ;;  %v528_v2 = vld [vmem:[%s204_s9 + $0x8] sm:$0xff]   ;;  %vm270_vm1 = vcmask 261120  }
  0x54   : > { %448 = vmatprep.subr.bf16.mxu0 %v648_v0  ;;  %452 = vmatprep.mubr.msk.bf16.mxu0 %vm649_vm0, %v648_v0  ;;  %v245_v3 = vld [vmem:[#allocation2] sm:$0xff]  ;;  %p233_p11 = scmp.lt.s32.totalorder %s633_s15, 1 }
  0x55   : > { %449 = vmatpush3.bf16.msra.mxu0 %v527_v1  ;;  %v246_v4 = vpack.c.bf16 %v245_v3, %v245_v3 }
  0x56   : > { %450 = vmatprep.subr.bf16.mxu0 %v648_v0  ;;  %s863_s15 = smov (!%p233_p11, %s633_s15), 1 }
  0x57   : > { %s235_s22 = scalar_lea.vmem %s839_s2, %s863_s15  ;;  %s438_s27 = sshll.u32 %s863_s15, 3 }
  0x58   : > { %v439_v5 = vld [vmem:[%s235_s22] ss:$0 sm:$0xff]  ;;  %s243_s5 = scalar_lea.vmem %s840_s3, %s438_s27 }
  0x59   : > { %451 = vmatpush3.bf16.msra.mxu0 %v528_v2 }
  0x5c   : > { %453 = vmatmul.mubr.msk.bf16.vlgmr.msra.gmra.mrb[0].mxu0 %vm270_vm1, %v246_v4 }
 0x12f   : > { %v308_v6 = vpop.f32.mrb[0].mxu0 }
 0x130   : > { %v309_v7 = vadd.f32 %v439_v5, %v308_v6  ;;  %v454_v8 = vpop.f32.mrb[1].mxu0 }
 0x131   : > { %v311_v9 = vpop.f32.mrb[2].mxu0 }
 0x132   : > { %v314_v10 = vmax.f32 %v309_v7, 0.0  ;;  %v455_v11 = vpop.f32.mrb[3].mxu0 }
 0x134   : > { %315 = vst [vmem:[%s243_s5] sm:$0xff] %v314_v10 }
 0x135 PF: > { %s17_s17 = sadd.s32 1, %s641_s17   ;;  %s855_s12 = smov %s625_s13 }
 0x136   : > { %p14_p4 = scmp.ge.s32.totalorder %s17_s17, 4   ;;  %s856_s13 = smov %s629_s14 }
 0x137   : > { %s857_s14 = smov %s768_s4  ;;  %s858_s15 = smov %s637_s16 }
 0x138   : > { %s859_s16 = smov %s861_s11  ;;  %16 = sbr.rel (!%p14_p4) target bundleno = 5 (0x5), region = 81 }
 0x13f   :  { %343 = vsyncpa [#allocation3], 1 }
 0x140   :  { %345 = vsyncpa [#allocation3 + $0x1], 1 }
 0x141   :  { %346 = vsyncpa [#allocation5], 1 }
 0x142   :  { %348 = vsyncpa [#allocation5 + $0x1], 1 }

</bundles_post_ra>
